<compile_context>
chip_gen: v6e
topology: v6e:2x2x1
jax: 0.10.0
libtpu: 0.0.40
codegen_flags: <defaults>
</compile_context>

<pallas_src>
import functools

import jax
import jax.numpy as jnp
from jax import lax
from jax.experimental import pallas as pl
from jax.experimental.pallas import tpu as pltpu


OUT_PAD = 128   # lane-dense width of the final logit slab (sliced to num_classes outside)
C2_PAD = 8      # padded width of conv2 per-head features (+1 dst-score col, zero padded)


# ---------------------------------------------------------------------------
# Fused kernel: conv1 (8 heads, concat) -> +bias -> ReLU -> conv2 (1 head) -> +bias
# ---------------------------------------------------------------------------
def _gat2_fused_kernel(x_ref, adj_ref, w1a_ref, w1s_ref, b1_ref, r_rep_ref,
                       bd_mask_ref, w2a_ref, w2s_ref, b2_ref, place_ref,
                       o_ref, *, heads, c1, c2):
    n = x_ref.shape[0]
    hc1 = heads * c1

    x = x_ref[...]                                    # (N, F) f32
    adjf = adj_ref[...].astype(jnp.float32)           # (N, N) 0/1, adj[i, j]=1 iff edge j->i
    r_rep = r_rep_ref[...]                             # (H, H*N) constant 0/1 block replicator

    # ---------------- layer 1: 8 heads, concat=True, heads packed in lanes ----
    # t1 = x @ [W1 | W1_h a_dst_h]  ->  [features (N, HC1) | alpha_dst (N, H)]
    t1 = jnp.dot(x, w1a_ref[...], preferred_element_type=jnp.float32)
    xt1 = t1[:, :hc1]                                  # (N, HC1)
    a_dst1 = t1[:, hc1:]                               # (N, H)

    # alpha_src in (H, N) row layout (contract F of both operands), then laid out
    # as one lane-dense (1, H*N) row: lane h*N + j holds alpha_src[j, head h].
    a_src1_t = lax.dot_general(w1s_ref[...], x, (((1,), (1,)), ((), ())),
                               preferred_element_type=jnp.float32)        # (H, N)
    flat_src = jnp.concatenate([a_src1_t[h:h + 1, :] for h in range(heads)],
                               axis=1)                                     # (1, H*N)

    # dst term replicated over each head's N-lane block with one MXU matmul
    dst_all = jnp.dot(a_dst1, r_rep, preferred_element_type=jnp.float32)   # (N, H*N)

    e = dst_all + flat_src                             # (N, H*N) raw attention logits
    e = jnp.maximum(e, jnp.float32(0.2) * e)           # LeakyReLU(0.2), single vmax
    # Row-global max is constant within every (row, head) softmax group => valid shift.
    m = jnp.max(e, axis=-1, keepdims=True)
    p = jnp.exp(e - m)
    # Multiplicative 0/1 edge mask (adjacency tiled across head blocks).
    adj_all = jnp.concatenate([adjf] * heads, axis=1)                      # (N, H*N)
    p = p * adj_all
    # Per-head segmented denominators with one matmul against the block replicator.
    denom = lax.dot_general(p, r_rep, (((1,), (1,)), ((), ())),
                            preferred_element_type=jnp.float32)            # (N, H)
    denom = jnp.maximum(denom, jnp.float32(1e-30))     # guard edge-less rows
    rden_all = jnp.dot(pl.reciprocal(denom, approx=True), r_rep,
                       preferred_element_type=jnp.float32)                 # (N, H*N)
    attn = p * rden_all

    # Single block-diagonal aggregation matmul: (N, H*N) @ (H*N, HC1).
    feat_bd = jnp.concatenate([xt1] * heads, axis=0) * bd_mask_ref[...]     # (H*N, HC1)
    h1 = jnp.dot(attn, feat_bd, preferred_element_type=jnp.float32)         # (N, HC1)
    h1 = jnp.maximum(h1 + b1_ref[...], 0.0)            # conv1 bias + F.relu
    # TODO(synk): F.dropout(p=0.6) and GATConv attention dropout omitted —
    #             eval-mode forward (training=False => identity).

    # ---------------- layer 2: 1 head, concat=False ---------------------------
    # w2a is only C2_PAD lanes wide: [W2 (c2 cols) | W2 a_dst | zeros]; the
    # aggregation runs on these 8 lanes only, then a tiny constant placement
    # matmul widens the result to the unmasked 128-lane output slab.
    t2 = jnp.dot(h1, w2a_ref[...], preferred_element_type=jnp.float32)      # (N, C2_PAD)
    a_dst2 = t2[:, c2:c2 + 1]                                                # (N, 1)
    a_src2_t = lax.dot_general(w2s_ref[...], h1, (((1,), (1,)), ((), ())),
                               preferred_element_type=jnp.float32)           # (1, N)
    e2 = a_dst2 + a_src2_t
    e2 = jnp.maximum(e2, jnp.float32(0.2) * e2)
    m2 = jnp.max(e2, axis=-1, keepdims=True)
    p2 = jnp.exp(e2 - m2) * adjf
    den2 = jnp.maximum(jnp.sum(p2, axis=-1, keepdims=True), jnp.float32(1e-30))
    attn2 = p2 * pl.reciprocal(den2, approx=True)
    agg2 = jnp.dot(attn2, t2, preferred_element_type=jnp.float32)            # (N, C2_PAD)
    # place keeps only the num_classes columns (drops the dst-score column and
    # zero-fills lanes >= num_classes), then the conv2 bias is added.
    o_ref[...] = jnp.dot(agg2, place_ref[...],
                         preferred_element_type=jnp.float32) + b2_ref[...]


# ---------------------------------------------------------------------------
# Parameter prep: fold attention vectors into the linear weights (plain JAX,
# constant-folded under jit).
# ---------------------------------------------------------------------------
def _fold_attention_weights(w, att_src, att_dst, heads, out_ch):
    """Returns (w_aug, w_src_t):
       w_aug   (F, H*C + H): x @ w_aug = [per-head features | alpha_dst per head]
       w_src_t (H, F):       dot_general(w_src_t, x, contract F) = alpha_src.T
    """
    f = w.shape[0]
    w3 = w.reshape(f, heads, out_ch)
    w_dst = jnp.einsum("fhc,hc->fh", w3, att_dst)
    w_src_t = jnp.einsum("fhc,hc->hf", w3, att_src)
    return jnp.concatenate([w, w_dst], axis=1), w_src_t


def gat_forward(params, x, adj, *, hidden_channels, num_classes, heads=8):
    n, _ = x.shape
    c1 = hidden_channels
    hc1 = heads * c1

    p1, p2 = params["conv1"], params["conv2"]
    w1a, w1s_t = _fold_attention_weights(p1["w"], p1["att_src"], p1["att_dst"],
                                         heads, c1)
    b1 = p1["bias"].reshape(1, hc1)

    w2a_c, w2s_t = _fold_attention_weights(p2["w"], p2["att_src"], p2["att_dst"],
                                           1, num_classes)
    w2a = jnp.zeros((hc1, C2_PAD), jnp.float32).at[:, :num_classes + 1].set(w2a_c)
    b2p = jnp.zeros((1, OUT_PAD), jnp.float32).at[:, :num_classes].set(p2["bias"])

    # Constant structural 0/1 matrices (shape-only; folded to literals under jit).
    r_rep = jnp.kron(jnp.eye(heads, dtype=jnp.float32),
                     jnp.ones((1, n), jnp.float32))            # (H, H*N)
    bd_mask = jnp.kron(jnp.eye(heads, dtype=jnp.float32),
                       jnp.ones((n, c1), jnp.float32))         # (H*N, HC1)
    place = jnp.zeros((C2_PAD, OUT_PAD), jnp.float32).at[
        :num_classes, :num_classes].set(jnp.eye(num_classes, dtype=jnp.float32))

    kernel = functools.partial(_gat2_fused_kernel, heads=heads, c1=c1,
                               c2=num_classes)
    vmem = pl.BlockSpec(memory_space=pltpu.MemorySpace.VMEM)
    # TODO(synk): for large N, add a row-tiled "parallel" grid over destination
    #             rows (tile a multiple of 8/128), cast attn / feature slabs to
    #             bf16 for the MXU, set vmem_limit_bytes, and split the two GAT
    #             layers into separate pallas_calls so the full (N, HC1) h1 need
    #             not stay resident (matters first on v7x's 64 MiB VMEM / 2 TCs).
    out = pl.pallas_call(
        kernel,
        out_shape=jax.ShapeDtypeStruct((n, OUT_PAD), jnp.float32),
        in_specs=[vmem] * 11,
        out_specs=vmem,
    )(x, adj, w1a, w1s_t, b1, r_rep, bd_mask, w2a, w2s_t, b2p, place)
    return out[:, :num_classes]


# ---------------------------------------------------------------------------
# Deterministic parameter init (shapes follow torch_geometric.nn.GATConv)
# ---------------------------------------------------------------------------
def init_params(key, num_features, hidden_channels, num_classes):
    ks = jax.random.split(key, 6)

    def glorot(k, shape, fan_in, fan_out):
        lim = jnp.sqrt(6.0 / (fan_in + fan_out))
        return jax.random.uniform(k, shape, jnp.float32, -lim, lim)

    h = 8
    conv1 = {
        "w": glorot(ks[0], (num_features, h * hidden_channels),
                    num_features, h * hidden_channels),
        "att_src": glorot(ks[1], (h, hidden_channels), hidden_channels, 1),
        "att_dst": glorot(ks[2], (h, hidden_channels), hidden_channels, 1),
        "bias": jnp.zeros((h * hidden_channels,), jnp.float32),
    }
    conv2 = {
        "w": glorot(ks[3], (h * hidden_channels, num_classes),
                    h * hidden_channels, num_classes),
        "att_src": glorot(ks[4], (1, num_classes), num_classes, 1),
        "att_dst": glorot(ks[5], (1, num_classes), num_classes, 1),
        "bias": jnp.zeros((num_classes,), jnp.float32),
    }
    return {"conv1": conv1, "conv2": conv2}


if __name__ == "__main__":
    key = jax.random.PRNGKey(0)
    k_param, k_x, k_e = jax.random.split(key, 3)

    N = 32               # nodes
    NUM_FEATURES = 16
    HIDDEN = 8           # hidden_channels (x 8 heads -> 64 after conv1)
    NUM_CLASSES = 4
    E = 64               # edges

    params = init_params(k_param, NUM_FEATURES, HIDDEN, NUM_CLASSES)
    x = jax.random.normal(k_x, (N, NUM_FEATURES), jnp.float32)
    edge_index = jax.random.randint(k_e, (2, E), 0, N)   # row 0 = src, row 1 = dst

    # Compact int8 adjacency with self loops: adj[dst, src] = 1 (applied as a
    # multiplicative softmax mask in-kernel — no dense f32 -1e30 slab shipped).
    adj_f = jnp.zeros((N, N), jnp.float32).at[edge_index[1], edge_index[0]].set(1.0)
    adj_f = jnp.maximum(adj_f, jnp.eye(N, dtype=jnp.float32))
    adj = adj_f.astype(jnp.int8)

    fwd = jax.jit(functools.partial(gat_forward, hidden_channels=HIDDEN,
                                    num_classes=NUM_CLASSES))
    out = fwd(params, x, adj)
    jax.block_until_ready(out)
    assert out.shape == (N, NUM_CLASSES) and out.dtype == jnp.float32
    assert bool(jnp.all(jnp.isfinite(out)))
    print("KERNEL_OK")
</pallas_src>

<mosaic_0001>
module attributes {stable_mosaic.version = 11 : i64} {
  func.func @_gat2_fused_kernel(%arg0: memref<32x16xf32, #tpu.memory_space<vmem>>, %arg1: memref<32x32xi8, #tpu.memory_space<vmem>>, %arg2: memref<16x72xf32, #tpu.memory_space<vmem>>, %arg3: memref<8x16xf32, #tpu.memory_space<vmem>>, %arg4: memref<1x64xf32, #tpu.memory_space<vmem>>, %arg5: memref<8x256xf32, #tpu.memory_space<vmem>>, %arg6: memref<256x64xf32, #tpu.memory_space<vmem>>, %arg7: memref<64x8xf32, #tpu.memory_space<vmem>>, %arg8: memref<1x64xf32, #tpu.memory_space<vmem>>, %arg9: memref<1x128xf32, #tpu.memory_space<vmem>>, %arg10: memref<8x128xf32, #tpu.memory_space<vmem>>, %arg11: memref<32x128xf32, #tpu.memory_space<vmem>>) attributes {dimension_semantics = [], scalar_prefetch = 0 : i64, scratch_operands = 0 : i64, tpu.core_type = #tpu.core_type<tc>} {
    %c0 = arith.constant 0 : index
    %c0_0 = arith.constant 0 : index
    %0 = vector.load %arg0[%c0, %c0_0] : memref<32x16xf32, #tpu.memory_space<vmem>>, vector<32x16xf32>
    %c0_1 = arith.constant 0 : index
    %c0_2 = arith.constant 0 : index
    %1 = vector.load %arg1[%c0_1, %c0_2] : memref<32x32xi8, #tpu.memory_space<vmem>>, vector<32x32xi8>
    %2 = arith.sitofp %1 : vector<32x32xi8> to vector<32x32xf32>
    %c0_3 = arith.constant 0 : index
    %c0_4 = arith.constant 0 : index
    %3 = vector.load %arg5[%c0_3, %c0_4] : memref<8x256xf32, #tpu.memory_space<vmem>>, vector<8x256xf32>
    %c0_5 = arith.constant 0 : index
    %c0_6 = arith.constant 0 : index
    %4 = vector.load %arg2[%c0_5, %c0_6] : memref<16x72xf32, #tpu.memory_space<vmem>>, vector<16x72xf32>
    %cst = arith.constant dense<0.000000e+00> : vector<32x72xf32>
    %5 = tpu.matmul %0, %4, %cst {dimension_numbers = #tpu.dot_dimension_numbers<[1], [0], [0], [1], [0, 0, 1, 1], [], []>} : vector<32x16xf32>, vector<16x72xf32>, vector<32x72xf32> -> vector<32x72xf32>
    %6 = vector.extract_strided_slice %5 {offsets = [0, 0], sizes = [32, 64], strides = [1, 1]} : vector<32x72xf32> to vector<32x64xf32>
    %7 = vector.extract_strided_slice %5 {offsets = [0, 64], sizes = [32, 8], strides = [1, 1]} : vector<32x72xf32> to vector<32x8xf32>
    %c0_7 = arith.constant 0 : index
    %c0_8 = arith.constant 0 : index
    %8 = vector.load %arg3[%c0_7, %c0_8] : memref<8x16xf32, #tpu.memory_space<vmem>>, vector<8x16xf32>
    %cst_9 = arith.constant dense<0.000000e+00> : vector<8x32xf32>
    %9 = tpu.matmul %8, %0, %cst_9 {dimension_numbers = #tpu.dot_dimension_numbers<[1], [1], [0], [0], [0, 0, 1, 0], [], []>} : vector<8x16xf32>, vector<32x16xf32>, vector<8x32xf32> -> vector<8x32xf32>
    %10 = vector.extract_strided_slice %9 {offsets = [0, 0], sizes = [1, 32], strides = [1, 1]} : vector<8x32xf32> to vector<1x32xf32>
    %11 = vector.extract_strided_slice %9 {offsets = [1, 0], sizes = [1, 32], strides = [1, 1]} : vector<8x32xf32> to vector<1x32xf32>
    %12 = vector.extract_strided_slice %9 {offsets = [2, 0], sizes = [1, 32], strides = [1, 1]} : vector<8x32xf32> to vector<1x32xf32>
    %13 = vector.extract_strided_slice %9 {offsets = [3, 0], sizes = [1, 32], strides = [1, 1]} : vector<8x32xf32> to vector<1x32xf32>
    %14 = vector.extract_strided_slice %9 {offsets = [4, 0], sizes = [1, 32], strides = [1, 1]} : vector<8x32xf32> to vector<1x32xf32>
    %15 = vector.extract_strided_slice %9 {offsets = [5, 0], sizes = [1, 32], strides = [1, 1]} : vector<8x32xf32> to vector<1x32xf32>
    %16 = vector.extract_strided_slice %9 {offsets = [6, 0], sizes = [1, 32], strides = [1, 1]} : vector<8x32xf32> to vector<1x32xf32>
    %17 = vector.extract_strided_slice %9 {offsets = [7, 0], sizes = [1, 32], strides = [1, 1]} : vector<8x32xf32> to vector<1x32xf32>
    %18 = tpu.concatenate %10, %11, %12, %13, %14, %15, %16, %17 in 1 : vector<1x32xf32>, vector<1x32xf32>, vector<1x32xf32>, vector<1x32xf32>, vector<1x32xf32>, vector<1x32xf32>, vector<1x32xf32>, vector<1x32xf32> -> vector<1x256xf32>
    %cst_10 = arith.constant dense<0.000000e+00> : vector<32x256xf32>
    %19 = tpu.matmul %7, %3, %cst_10 {dimension_numbers = #tpu.dot_dimension_numbers<[1], [0], [0], [1], [0, 0, 1, 1], [], []>} : vector<32x8xf32>, vector<8x256xf32>, vector<32x256xf32> -> vector<32x256xf32>
    %20 = vector.broadcast %18 : vector<1x256xf32> to vector<32x256xf32>
    %21 = arith.addf %19, %20 : vector<32x256xf32>
    %cst_11 = arith.constant 2.000000e-01 : f32
    %22 = vector.broadcast %cst_11 : f32 to vector<32x256xf32>
    %23 = arith.mulf %22, %21 : vector<32x256xf32>
    %24 = arith.maximumf %21, %23 : vector<32x256xf32>
    %cst_12 = arith.constant dense<0xFF800000> : vector<32xf32>
    %25 = vector.multi_reduction <maximumf>, %24, %cst_12 [1] : vector<32x256xf32> to vector<32xf32>
    %26 = vector.shape_cast %25 : vector<32xf32> to vector<32x1xf32>
    %27 = vector.broadcast %26 : vector<32x1xf32> to vector<32x256xf32>
    %28 = arith.subf %24, %27 : vector<32x256xf32>
    %29 = math.exp %28 : vector<32x256xf32>
    %30 = tpu.concatenate %2, %2, %2, %2, %2, %2, %2, %2 in 1 : vector<32x32xf32>, vector<32x32xf32>, vector<32x32xf32>, vector<32x32xf32>, vector<32x32xf32>, vector<32x32xf32>, vector<32x32xf32>, vector<32x32xf32> -> vector<32x256xf32>
    %31 = arith.mulf %29, %30 : vector<32x256xf32>
    %cst_13 = arith.constant dense<0.000000e+00> : vector<32x8xf32>
    %32 = tpu.matmul %31, %3, %cst_13 {dimension_numbers = #tpu.dot_dimension_numbers<[1], [1], [0], [0], [0, 0, 1, 0], [], []>} : vector<32x256xf32>, vector<8x256xf32>, vector<32x8xf32> -> vector<32x8xf32>
    %cst_14 = arith.constant 1.000000e-30 : f32
    %33 = vector.broadcast %cst_14 : f32 to vector<32x8xf32>
    %34 = arith.maximumf %32, %33 : vector<32x8xf32>
    %35 = tpu.reciprocal %34 {approx = true} : vector<32x8xf32> -> vector<32x8xf32>
    %cst_15 = arith.constant dense<0.000000e+00> : vector<32x256xf32>
    %36 = tpu.matmul %35, %3, %cst_15 {dimension_numbers = #tpu.dot_dimension_numbers<[1], [0], [0], [1], [0, 0, 1, 1], [], []>} : vector<32x8xf32>, vector<8x256xf32>, vector<32x256xf32> -> vector<32x256xf32>
    %37 = arith.mulf %31, %36 : vector<32x256xf32>
    %38 = tpu.concatenate %6, %6, %6, %6, %6, %6, %6, %6 in 0 : vector<32x64xf32>, vector<32x64xf32>, vector<32x64xf32>, vector<32x64xf32>, vector<32x64xf32>, vector<32x64xf32>, vector<32x64xf32>, vector<32x64xf32> -> vector<256x64xf32>
    %c0_16 = arith.constant 0 : index
    %c0_17 = arith.constant 0 : index
    %39 = vector.load %arg6[%c0_16, %c0_17] : memref<256x64xf32, #tpu.memory_space<vmem>>, vector<256x64xf32>
    %40 = arith.mulf %38, %39 : vector<256x64xf32>
    %cst_18 = arith.constant dense<0.000000e+00> : vector<32x64xf32>
    %41 = tpu.matmul %37, %40, %cst_18 {dimension_numbers = #tpu.dot_dimension_numbers<[1], [0], [0], [1], [0, 0, 1, 1], [], []>} : vector<32x256xf32>, vector<256x64xf32>, vector<32x64xf32> -> vector<32x64xf32>
    %c0_19 = arith.constant 0 : index
    %c0_20 = arith.constant 0 : index
    %42 = vector.load %arg4[%c0_19, %c0_20] : memref<1x64xf32, #tpu.memory_space<vmem>>, vector<1x64xf32>
    %43 = vector.broadcast %42 : vector<1x64xf32> to vector<32x64xf32>
    %44 = arith.addf %41, %43 : vector<32x64xf32>
    %cst_21 = arith.constant 0.000000e+00 : f32
    %45 = vector.broadcast %cst_21 : f32 to vector<32x64xf32>
    %46 = arith.maximumf %44, %45 : vector<32x64xf32>
    %c0_22 = arith.constant 0 : index
    %c0_23 = arith.constant 0 : index
    %47 = vector.load %arg7[%c0_22, %c0_23] : memref<64x8xf32, #tpu.memory_space<vmem>>, vector<64x8xf32>
    %cst_24 = arith.constant dense<0.000000e+00> : vector<32x8xf32>
    %48 = tpu.matmul %46, %47, %cst_24 {dimension_numbers = #tpu.dot_dimension_numbers<[1], [0], [0], [1], [0, 0, 1, 1], [], []>} : vector<32x64xf32>, vector<64x8xf32>, vector<32x8xf32> -> vector<32x8xf32>
    %49 = vector.extract_strided_slice %48 {offsets = [0, 4], sizes = [32, 1], strides = [1, 1]} : vector<32x8xf32> to vector<32x1xf32>
    %c0_25 = arith.constant 0 : index
    %c0_26 = arith.constant 0 : index
    %50 = vector.load %arg8[%c0_25, %c0_26] : memref<1x64xf32, #tpu.memory_space<vmem>>, vector<1x64xf32>
    %cst_27 = arith.constant dense<0.000000e+00> : vector<1x32xf32>
    %51 = tpu.matmul %50, %46, %cst_27 {dimension_numbers = #tpu.dot_dimension_numbers<[1], [1], [0], [0], [0, 0, 1, 0], [], []>} : vector<1x64xf32>, vector<32x64xf32>, vector<1x32xf32> -> vector<1x32xf32>
    %52 = vector.broadcast %49 : vector<32x1xf32> to vector<32x32xf32>
    %53 = vector.broadcast %51 : vector<1x32xf32> to vector<32x32xf32>
    %54 = arith.addf %52, %53 : vector<32x32xf32>
    %cst_28 = arith.constant 2.000000e-01 : f32
    %55 = vector.broadcast %cst_28 : f32 to vector<32x32xf32>
    %56 = arith.mulf %55, %54 : vector<32x32xf32>
    %57 = arith.maximumf %54, %56 : vector<32x32xf32>
    %cst_29 = arith.constant dense<0xFF800000> : vector<32xf32>
    %58 = vector.multi_reduction <maximumf>, %57, %cst_29 [1] : vector<32x32xf32> to vector<32xf32>
    %59 = vector.shape_cast %58 : vector<32xf32> to vector<32x1xf32>
    %60 = vector.broadcast %59 : vector<32x1xf32> to vector<32x32xf32>
    %61 = arith.subf %57, %60 : vector<32x32xf32>
    %62 = math.exp %61 : vector<32x32xf32>
    %63 = arith.mulf %62, %2 : vector<32x32xf32>
    %cst_30 = arith.constant dense<0.000000e+00> : vector<32xf32>
    %64 = vector.multi_reduction <add>, %63, %cst_30 [1] : vector<32x32xf32> to vector<32xf32>
    %65 = vector.shape_cast %64 : vector<32xf32> to vector<32x1xf32>
    %cst_31 = arith.constant 1.000000e-30 : f32
    %66 = vector.broadcast %cst_31 : f32 to vector<32x1xf32>
    %67 = arith.maximumf %65, %66 : vector<32x1xf32>
    %68 = tpu.reciprocal %67 {approx = true} : vector<32x1xf32> -> vector<32x1xf32>
    %69 = vector.broadcast %68 : vector<32x1xf32> to vector<32x32xf32>
    %70 = arith.mulf %63, %69 : vector<32x32xf32>
    %cst_32 = arith.constant dense<0.000000e+00> : vector<32x8xf32>
    %71 = tpu.matmul %70, %48, %cst_32 {dimension_numbers = #tpu.dot_dimension_numbers<[1], [0], [0], [1], [0, 0, 1, 1], [], []>} : vector<32x32xf32>, vector<32x8xf32>, vector<32x8xf32> -> vector<32x8xf32>
    %c0_33 = arith.constant 0 : index
    %c0_34 = arith.constant 0 : index
    %72 = vector.load %arg10[%c0_33, %c0_34] : memref<8x128xf32, #tpu.memory_space<vmem>>, vector<8x128xf32>
    %cst_35 = arith.constant dense<0.000000e+00> : vector<32x128xf32>
    %73 = tpu.matmul %71, %72, %cst_35 {dimension_numbers = #tpu.dot_dimension_numbers<[1], [0], [0], [1], [0, 0, 1, 1], [], []>} : vector<32x8xf32>, vector<8x128xf32>, vector<32x128xf32> -> vector<32x128xf32>
    %c0_36 = arith.constant 0 : index
    %c0_37 = arith.constant 0 : index
    %74 = vector.load %arg9[%c0_36, %c0_37] : memref<1x128xf32, #tpu.memory_space<vmem>>, vector<1x128xf32>
    %75 = vector.broadcast %74 : vector<1x128xf32> to vector<32x128xf32>
    %76 = arith.addf %73, %75 : vector<32x128xf32>
    %c0_38 = arith.constant 0 : index
    %c0_39 = arith.constant 0 : index
    %77 = vector.load %arg11[%c0_38, %c0_39] : memref<32x128xf32, #tpu.memory_space<vmem>>, vector<32x128xf32>
    tpu.vector_store %arg11[%c0_38, %c0_39], %76 {strides = array<i32>} : memref<32x128xf32, #tpu.memory_space<vmem>>, vector<32x128xf32>,
    return
  }
}

</mosaic_0001>

<bundles_post_ra>
// kernel: gat_forward.1
= control target key start
LH: loop header
LB: loop body
LE: loop exit
PB: predicated region body
PF: predicated region fallthrough
CT: control target
= control target key end

     0   :  { %vm55_vm0 = vcmask 130048   ;;  %v1577_v3 = vmov 0.0   ;;  %vm1578_vm1 = vmmov 0   ;;  %s1580_s16 = smov 32   ;;  %vm283_vm2 = vcmask 64512   ;;  %s2081_s2 = inlined_call_operand.vmem [shape: f32[16,72], index: 2, kind: input, shape index: {}]   ;;  %s2082_s0 = inlined_call_operand.vmem [shape: f32[32,16], index: 0, kind: input, shape index: {}]   ;;  %s2083_s3 = inlined_call_operand.vmem [shape: f32[8,16], index: 3, kind: input, shape index: {}]   ;;  %s2084_s5 = inlined_call_operand.vmem [shape: f32[8,256], index: 5, kind: input, shape index: {}]   ;;  %s2085_s6 = inlined_call_operand.vmem [shape: f32[256,64], index: 6, kind: input, shape index: {}]   ;;  %s2086_s1 = inlined_call_operand.vmem [shape: s8[32,32], index: 1, kind: input, shape index: {}]   ;;  %s2087_s7 = inlined_call_operand.vmem [shape: f32[64,8], index: 7, kind: input, shape index: {}]   ;;  %s2088_s4 = inlined_call_operand.vmem [shape: f32[1,64], index: 4, kind: input, shape index: {}]   ;;  %s2089_s8 = inlined_call_operand.vmem [shape: f32[1,64], index: 8, kind: input, shape index: {}]   ;;  %s2090_s10 = inlined_call_operand.vmem [shape: f32[8,128], index: 10, kind: input, shape index: {}]   ;;  %s2091_s9 = inlined_call_operand.vmem [shape: f32[1,128], index: 9, kind: input, shape index: {}]   ;;  %s2092_s11 = inlined_call_operand.vmem [shape: f32[32,128], index: 11, kind: output, shape index: {}]  }
   0x1   :  { %v54_v0 = vld [vmem:[%s2081_s2 + $0x8] sm:$0xff]  ;;  %v53_v1 = vld [vmem:[%s2081_s2] sm:$0xff]  ;;  %1463 = vmatprep.subr.mxu1 %v1577_v3  ;;  %1471 = vmatprep.mubr.msk.f32.mxu1 %vm1578_vm1, %v1577_v3  ;;  %v41_v4 = vld [vmem:[%s2082_s0 + $0x18] sm:$0xff]  ;;  %s1579_s2 = smov 64   ;;  %vm254_vm3 = vcmask 261120   ;;  %vm256_vm4 = vcmask 523264  }
   0x2   :  { %v38_v2 = vld [vmem:[%s2082_s0] sm:$0xff]  ;;  %1453 = vmatprep.subr.mxu0 %v54_v0  ;;  %v39_v5 = vld [vmem:[%s2082_s0 + $0x8] sm:$0xff]  ;;  %1464 = vmatpush3.xpose.msk.msra.mxu1 %vm55_vm0, %v41_v4  ;;  %v40_v6 = vld [vmem:[%s2082_s0 + $0x10] sm:$0xff]  ;;  %vm258_vm5 = vcmask 785408  }
   0x3   :  { %1457 = vmatprep.mubr.msk.f32.mxu0 %vm55_vm0, %v38_v2  ;;  %1454 = vmatpush3.msra.mxu0 %v54_v0  ;;  %v153_v7 = vld [vmem:[%s2083_s3] sm:$0xff]  ;;  %v52_v8 = vld [vmem:[%s2084_s5 + $0x8] sm:$0xff]  ;;  %v726_v23 = vld [vmem:[%s2085_s6 + $0xf8] sm:$0xff] }
   0x4   :  { %1455 = vmatprep.subr.mxu0 %v53_v1  ;;  %1465 = vmatprep.subr.mxu1 %v1577_v3  ;;  %v1686_v9 = vld [vmem:[%s2084_s5] sm:$0xff]  ;;  %v724_v10 = vld [vmem:[%s2085_s6 + $0xe8] sm:$0xff]  ;;  %v710_v31 = vld [vmem:[%s2085_s6 + $0x78] sm:$0xff]  ;;  %s1581_s5 = smov 96  }
   0x5   :  { %1456 = vmatpush3.msra.mxu0 %v53_v1  ;;  %v708_v11 = vld [vmem:[%s2085_s6 + $0x68] sm:$0xff]  ;;  %v723_v16 = vld [vmem:[%s2085_s6 + $0xe0] sm:$0xff]  ;;  %v722_v32 = vld [vmem:[%s2085_s6 + $0xd8] sm:$0xff] }
   0x6   :  { %1458 = vmatmul.mubr.msk.f32.vlgmr.msra.gmra.mxu0 %vm55_vm0, %v39_v5  ;;  %1466 = vmatpush3.xpose.msk.msra.mxu1 %vm55_vm0, %v40_v6  ;;  %v720_v12 = vld [vmem:[%s2085_s6 + $0xc8] sm:$0xff]  ;;  %v707_v17 = vld [vmem:[%s2085_s6 + $0x60] sm:$0xff]  ;;  %v706_v33 = vld [vmem:[%s2085_s6 + $0x58] sm:$0xff] }
   0x7   :  { %1460 = vmatprep.mubr.msk.f32.mxu0 %vm55_vm0, %v40_v6  ;;  %1467 = vmatprep.subr.mxu1 %v1577_v3  ;;  %v704_v13 = vld [vmem:[%s2085_s6 + $0x48] sm:$0xff]  ;;  %v719_v18 = vld [vmem:[%s2085_s6 + $0xc0] sm:$0xff]  ;;  %v718_v40 = vld [vmem:[%s2085_s6 + $0xb8] sm:$0xff] }
   0x8   :  { %322 = vmatprep.subr.mxu0 %v52_v8  ;;  %v716_v14 = vld [vmem:[%s2085_s6 + $0xa8] sm:$0xff]  ;;  %v703_v20 = vld [vmem:[%s2085_s6 + $0x40] sm:$0xff]  ;;  %v702_v41 = vld [vmem:[%s2085_s6 + $0x38] sm:$0xff] }
   0x9   :  { %323 = vmatpush1.msra.mxu0 %v1686_v9  ;;  %v700_v15 = vld [vmem:[%s2085_s6 + $0x28] sm:$0xff]  ;;  %v715_v21 = vld [vmem:[%s2085_s6 + $0xa0] sm:$0xff]  ;;  %v714_v54 = vld [vmem:[%s2085_s6 + $0x98] sm:$0xff] }
   0xa   :  { %1461 = vmatmul.mubr.msk.f32.gmra.mxu0 %vm55_vm0, %v41_v4  ;;  %1468 = vmatpush3.xpose.msk.msra.mxu1 %vm55_vm0, %v39_v5  ;;  %v699_v22 = vld [vmem:[%s2085_s6 + $0x20] sm:$0xff]  ;;  %v712_v28 = vld [vmem:[%s2085_s6 + $0x88] sm:$0xff]  ;;  %v698_v55 = vld [vmem:[%s2085_s6 + $0x18] sm:$0xff] }
   0xb   :  { %356 = vmatprep.mubr.f32.mxu0 %v1577_v3  ;;  %1469 = vmatprep.subr.mxu1 %v1577_v3  ;;  %v696_v29 = vld [vmem:[%s2085_s6 + $0x8] sm:$0xff]  ;;  %v711_v56 = vld [vmem:[%s2085_s6 + $0x80] sm:$0xff] }
   0xc   :  { %628 = vmatprep.subr.mxu0 %v52_v8  ;;  %v695_v57 = vld [vmem:[%s2085_s6] sm:$0xff] }
   0xd   :  { %v1820_v5 = vld [vmem:[%s2086_s1] sm:$0xff] }
   0xe   :  { %1470 = vmatpush3.xpose.msk.msra.mxu1 %vm55_vm0, %v38_v2 }
   0xf   :  { %523 = vmatprep.subr.mxu1 %v52_v8  ;;  %v43_v8 = vunpack.c.0.s8 %v1820_v5 }
  0x11   :  { %1472 = vmatmul.mubr.msk.f32.vlgmr.msra.gmra.mxu1 %vm55_vm0, %v153_v7 }
  0x12   :  { %524 = vmatpush1.xpose.msra.mxu1 %v1686_v9 }
  0xc6   :  { %v1459_v19 = vpop.f32.mrf.mxu0 }
  0xc7   :  { %v1729_v24 = vmul.f32 %v1459_v19, %v724_v10  ;;  %v1731_v25 = vmul.f32 %v1459_v19, %v708_v11  ;;  %v1733_v26 = vmul.f32 %v1459_v19, %v720_v12  ;;  %v1735_v27 = vmul.f32 %v1459_v19, %v704_v13 }
  0xc8   :  { %v134_v30 = vpop.f32.mrf.mxu0  ;;  %v1752_v34 = vmul.f32 %v1459_v19, %v716_v14  ;;  %v1754_v35 = vmul.f32 %v1459_v19, %v700_v15  ;;  %v1775_v45 = vmul.f32 %v1459_v19, %v712_v28  ;;  %v1777_v46 = vmul.f32 %v1459_v19, %v696_v29 }
  0xc9   :  { %275 = vrot.lane.b32.xlu0 %v134_v30, %s1579_s2  ;;  %v1757_v36 = vmul.f32 %v723_v16, %v134_v30  ;;  %v1759_v37 = vmul.f32 %v707_v17, %v134_v30  ;;  %v1761_v38 = vmul.f32 %v719_v18, %v134_v30  ;;  %v1763_v39 = vmul.f32 %v703_v20, %v134_v30 }
  0xca   :  { %v1462_v42 = vpop.f32.mrf.mxu0  ;;  %v1771_v43 = vmul.f32 %v715_v21, %v134_v30  ;;  %v1773_v44 = vmul.f32 %v699_v22, %v134_v30  ;;  %v1810_v60 = vmul.f32 %v711_v56, %v134_v30  ;;  %v1812_v61 = vmul.f32 %v695_v57, %v134_v30 }
  0xcb   :  { %v758_v47 = vmul.f32 %v1462_v42, %v726_v23  ;;  %v1779_v48 = vmul.f32 %v1462_v42, %v710_v31  ;;  %v1781_v49 = vmul.f32 %v1462_v42, %v722_v32  ;;  %v1783_v50 = vmul.f32 %v1462_v42, %v706_v33 }
  0xcc   :  { %v1785_v51 = vpop.f32.mrf.mxu0  ;;  %v1787_v52 = vmul.f32 %v1462_v42, %v718_v40  ;;  %v1789_v53 = vmul.f32 %v1462_v42, %v702_v41  ;;  %v1806_v58 = vmul.f32 %v1462_v42, %v714_v54  ;;  %v1808_v59 = vmul.f32 %v1462_v42, %v698_v55 }
  0xcd   :  { %277 = vrot.lane.b32.xlu0 %v1459_v19, %s1579_s2  ;;  %279 = vrot.lane.b32.xlu1 %v1785_v51, %s1579_s2  ;;  %v1827_v10 = vcvt.s32.f32 %v43_v8  ;;  %v44_v11 = vunpack.c.1.s8 %v1820_v5  ;;  %v45_v12 = vunpack.c.2.s8 %v1820_v5 }
  0xce   :  { %1379 = vmatprep.subr.mxu1 %v758_v47 }
  0xcf   :  { %v1835_v13 = vcvt.s32.f32 %v44_v11  ;;  %v1841_v14 = vcvt.s32.f32 %v45_v12 }
  0xd1   :  { %281 = vrot.lane.b32.xlu1 %v1462_v42, %s1579_s2  ;;  %v223_v62 = vpop.f32.mrf.mxu1 }
  0xd2   :  { %v228_v63 = vrot.slane %v223_v62, 1  ;;  %v242_v0 = vrot.slane %v223_v62, 5  ;;  %v232_v2 = vrot.slane %v223_v62, 2  ;;  %v246_v4 = vrot.slane %v223_v62, 6 }
  0xd3   :  { %v1473_v1 = vpop.f32.mrf.mxu1  ;;  %v236_v6 = vrot.slane %v223_v62, 3  ;;  %v250_v7 = vrot.slane %v223_v62, 7  ;;  %v240_v22 = vrot.slane %v223_v62, 4 }
  0xd4   :  { %229 = vrot.lane.b32.xlu0 %v228_v63, %s1580_s16 }
  0xd5   :  { %243 = vrot.lane.b32.xlu1 %v242_v0, %s1580_s16 }
  0xd8   :  { %233 = vrot.lane.b32.xlu0 %v232_v2, %s1579_s2 }
  0xd9   :  { %247 = vrot.lane.b32.xlu1 %v246_v4, %s1579_s2 }
  0xdc   :  { %237 = vrot.lane.b32.xlu0 %v236_v6, %s1581_s5 }
  0xdd   :  { %251 = vrot.lane.b32.xlu1 %v250_v7, %s1581_s5 }
  0xe0   :  { %449 = vrot.lane.b32.xlu0 %v1827_v10, %s1579_s2 }
  0xe1   :  { %437 = vrot.lane.b32.xlu1 %v1827_v10, %s1580_s16 }
  0xe4   :  { %451 = vrot.lane.b32.xlu0 %v1835_v13, %s1579_s2 }
  0xe5   :  { %461 = vrot.lane.b32.xlu1 %v1827_v10, %s1581_s5 }
  0xe8   :  { %441 = vrot.lane.b32.xlu0 %v1841_v14, %s1580_s16 }
  0xe9   :  { %439 = vrot.lane.b32.xlu1 %v1835_v13, %s1580_s16 }
  0xed   :  { %463 = vrot.lane.b32.xlu1 %v1835_v13, %s1581_s5 }
  0xf1   :  { %453 = vrot.lane.b32.xlu1 %v1841_v14, %s1579_s2 }
 0x13b   :  { %v276_v15 = vpop.permute.xlu0 %275 }
 0x13c   :  { %1341 = vmatmul.mubr.msk.f32.vlgmr.msra.gmra.mxu0 %vm283_vm2, %v276_v15 }
 0x13d   :  { %362 = vmatprep.mubr.f32.mxu0 %v1577_v3  ;;  %629 = vmatpush1.msra.mxu0 %v1686_v9  ;;  %v263_v9 = vlaneseq }
 0x13f   :  { %v278_v16 = vpop.permute.xlu0 %277  ;;  %v280_v17 = vpop.permute.xlu1 %279  ;;  %v264_v29 = vshrl.u32 %v263_v9, 7 }
 0x140   :  { %1342 = vmatmul.mubr.msk.f32.gmra.mxu0 %vm283_vm2, %v278_v16 }
 0x141   :  { %368 = vmatprep.mubr.f32.mxu0 %v1577_v3  ;;  %v1864_v40 = vsub.s32 0, %v264_v29 }
 0x143   :  { %v282_v18 = vpop.permute.xlu1 %281 }
 0x144   :  { %1343 = vmatmul.mubr.msk.f32.gmra.mxu0 %vm283_vm2, %v280_v17 }
 0x145   :  { %374 = vmatprep.mubr.f32.mxu0 %v1577_v3 }
 0x146   :  { %v230_v19 = vpop.permute.xlu0 %229 }
 0x147   :  { %v244_v20 = vpop.permute.xlu1 %243  ;;  %v255_v28 = vsel %vm254_vm3, %v223_v62, %v230_v19 }
 0x148   :  { %1344 = vmatmul.mubr.msk.f32.gmra.mxu0 %vm283_vm2, %v282_v18  ;;  %v260_v30 = vsel %vm254_vm3, %v240_v22, %v244_v20  ;;  %v46_v20 = vunpack.c.3.s8 %v1820_v5 }
 0x149   :  { %662 = vmatprep.mubr.f32.mxu0 %v1577_v3 }
 0x14a   :  { %v234_v21 = vpop.permute.xlu0 %233 }
 0x14b   :  { %v248_v23 = vpop.permute.xlu1 %247  ;;  %v257_v31 = vsel %vm256_vm4, %v255_v28, %v234_v21  ;;  %v1871_v21 = vcvt.s32.f32 %v46_v20 }
 0x14c   :  { %v261_v33 = vsel %vm256_vm4, %v260_v30, %v248_v23 }
 0x14e   :  { %v238_v32 = vpop.permute.xlu0 %237 }
 0x14f   :  { %v252_v41 = vpop.permute.xlu1 %251  ;;  %v259_v42 = vsel %vm258_vm5, %v257_v31, %v238_v32 }
 0x150   :  { %v262_v47 = vsel %vm258_vm5, %v261_v33, %v252_v41  ;;  %v266_v54 = vrot.slane %v259_v42, %v1864_v40 }
 0x151   :  { %v270_v56 = vrot.slane %v262_v47, %v1864_v40 }
 0x1fc   :  { %v358_v55 = vpop.f32.mrf.mxu0 }
 0x1fd   :  { %v359_v57 = vadd.f32 %v358_v55, %v266_v54 }
 0x1fe   :  { %v360_v62 = vpop.f32.mrf.mxu0 }
 0x1ff   :  { %v381_v63 = vmul.f32 0.2, %v359_v57  ;;  %v361_v0 = vadd.f32 %v360_v62, %v270_v56 }
 0x200   :  { %v364_v1 = vpop.f32.mrf.mxu0 }
 0x201   :  { %v382_v2 = vmul.f32 0.2, %v361_v0  ;;  %v365_v4 = vadd.f32 %v364_v1, %v266_v54  ;;  %v389_v7 = vmax.f32 %v359_v57, %v381_v63  ;;  %v450_v1 = vpop.permute.xlu0 %449 }
 0x202   :  { %v366_v6 = vpop.f32.mrf.mxu0 }
 0x203   :  { %v390_v8 = vmax.f32 %v361_v0, %v382_v2  ;;  %v383_v11 = vmul.f32 0.2, %v365_v4  ;;  %v367_v12 = vadd.f32 %v366_v6, %v270_v56 }
 0x204   :  { %v370_v9 = vpop.f32.mrf.mxu0 }
 0x205   :  { %v384_v15 = vmul.f32 0.2, %v367_v12  ;;  %v397_v16 = vmax.f32 %v389_v7, %v390_v8  ;;  %v391_v17 = vmax.f32 %v365_v4, %v383_v11  ;;  %v371_v30 = vadd.f32 %v370_v9, %v266_v54  ;;  %v452_v4 = vpop.permute.xlu0 %451 }
 0x206   :  { %v372_v22 = vpop.f32.mrf.mxu0 }
 0x207   :  { %v392_v18 = vmax.f32 %v367_v12, %v384_v15  ;;  %398 = vmax.xlane.f32.xlu0 %v397_v16  ;;  %v373_v28 = vadd.f32 %v372_v22, %v270_v56  ;;  %v385_v5 = vmul.f32 0.2, %v371_v30 }
 0x208   :  { %v376_v23 = vpop.f32.mrf.mxu0 }
 0x209   :  { %v400_v19 = vmax.f32 %v391_v17, %v392_v18  ;;  %v386_v31 = vmul.f32 0.2, %v373_v28  ;;  %v377_v33 = vadd.f32 %v376_v23, %v266_v54  ;;  %v1881_v47 = vmax.f32 %v371_v30, %v385_v5  ;;  %v438_v54 = vpop.permute.xlu1 %437  ;;  %v1893_v11 = vpop.permute.xlu0 %441 }
 0x20a   :  { %v378_v29 = vpop.f32.mrf.mxu0 }
 0x20b   :  { %401 = vmax.xlane.f32.xlu1 %v400_v19  ;;  %v379_v32 = vadd.f32 %v378_v29, %v270_v56  ;;  %v1879_v41 = vmax.f32 %v373_v28, %v386_v31  ;;  %v387_v55 = vmul.f32 0.2, %v377_v33  ;;  %v473_v31 = vsel %vm254_vm3, %v1827_v10, %v438_v54 }
 0x20d   :  { %v388_v42 = vmul.f32 0.2, %v379_v32  ;;  %v403_v62 = vmax.f32 %v1881_v47, %v1879_v41  ;;  %v1887_v63 = vmax.f32 %v377_v33, %v387_v55  ;;  %v462_v56 = vpop.permute.xlu1 %461  ;;  %v725_v55 = vld [vmem:[%s2085_s6 + $0xf0] sm:$0xff] }
 0x20f   :  { %v1883_v57 = vmax.f32 %v379_v32, %v388_v42  ;;  %v477_v32 = vsel %vm256_vm4, %v473_v31, %v450_v1  ;;  %v757_v1 = vmul.f32 %v725_v55, %v1785_v51 }
 0x210   :  { %v481_v5 = vsel %vm258_vm5, %v477_v32, %v462_v56 }
 0x211   :  { %v406_v0 = vmax.f32 %v1887_v63, %v1883_v57  ;;  %v440_v2 = vpop.permute.xlu1 %439 }
 0x215   :  { %v464_v6 = vpop.permute.xlu1 %463 }
 0x219   :  { %v1895_v12 = vpop.permute.xlu1 %453 }
 0x21c   :  { %443 = vrot.lane.b32.xlu1 %v1871_v21, %s1580_s16 }
 0x21d   :  { %465 = vrot.lane.b32.xlu0 %v1841_v14, %s1581_s5 }
 0x220   :  { %467 = vrot.lane.b32.xlu1 %v1871_v21, %s1581_s5 }
 0x23c   :  { %404 = vmax.xlane.f32.xlu0 %v403_v62  ;;  %v709_v62 = vld [vmem:[%s2085_s6 + $0x70] sm:$0xff] }
 0x240   :  { %407 = vmax.xlane.f32.xlu0 %v406_v0 }
 0x256   :  { %455 = vrot.lane.b32.xlu0 %v1871_v21, %s1579_s2 }
 0x290   :  { %v399_v15 = vpop.xlane.xlu0 %398 }
 0x291   :  { %v409_v16 = vsub.f32 %v389_v7, %v399_v15  ;;  %v410_v19 = vsub.f32 %v390_v8, %v399_v15  ;;  %v474_v7 = vsel %vm254_vm3, %v1835_v13, %v440_v2 }
 0x293   :  { %v417_v20 = vmul.f32 1.442695, %v409_v16  ;;  %v419_v9 = vmul.f32 1.442695, %v410_v19 }
 0x294   :  { %v402_v22 = vpop.xlane.xlu1 %401 }
 0x295   :  { %1537 = vpow2.f32 %v417_v20  ;;  %v411_v23 = vsub.f32 %v391_v17, %v402_v22  ;;  %v412_v28 = vsub.f32 %v392_v18, %v402_v22  ;;  %v478_v17 = vsel %vm256_vm4, %v474_v7, %v452_v4 }
 0x296   :  { %1539 = vpow2.f32 %v419_v9  ;;  %v482_v54 = vsel %vm258_vm5, %v478_v17, %v464_v6  ;;  %v741_v4 = vmul.f32 %v709_v62, %v1785_v51  ;;  %v721_v6 = vld [vmem:[%s2085_s6 + $0xd0] sm:$0xff] }
 0x297   :  { %v421_v29 = vmul.f32 1.442695, %v411_v23  ;;  %v423_v30 = vmul.f32 1.442695, %v412_v28 }
 0x299   :  { %1541 = vpow2.f32 %v421_v29 }
 0x29a   :  { %1543 = vpow2.f32 %v423_v30 }
 0x2a2   :  { %v1538_v8 = vpop.eup %1537 }
 0x2a3   :  { %v1540_v33 = vpop.eup %1539  ;;  %v1904_v18 = vmul.f32 %v1538_v8, %v481_v5 }
 0x2a4   :  { %v1906_v42 = vmul.f32 %v1540_v33, %v481_v5 }
 0x2a6   :  { %v1542_v0 = vpop.eup %1541  ;;  %557 = vmatprep.mubr.f32.mxu1 %v1906_v42 }
 0x2a7   :  { %v1544_v56 = vpop.eup %1543  ;;  %558 = vmatmul.mubr.f32.vlgmr.msra.gmra.mxu1 %v1904_v18  ;;  %v1918_v2 = vmul.f32 %v1542_v0, %v482_v54 }
 0x2a8   :  { %1380 = vmatpush3.msra.mxu1 %v1779_v48  ;;  %v1922_v15 = vmul.f32 %v1544_v56, %v482_v54  ;;  %v705_v48 = vld [vmem:[%s2085_s6 + $0x50] sm:$0xff] }
 0x2a9   :  { %1381 = vmatprep.subr.mxu1 %v757_v1 }
 0x2aa   :  { %1382 = vmatpush3.msra.mxu1 %v741_v4  ;;  %562 = vmatprep.mubr.f32.mxu1 %v1922_v15 }
 0x2ab   :  { %1383 = vmatprep.subr.mxu1 %v1729_v24  ;;  %563 = vmatmul.mubr.f32.gmra.mxu1 %v1918_v2  ;;  %v753_v24 = vmul.f32 %v721_v6, %v1785_v51 }
 0x2ac   :  { %1384 = vmatpush3.msra.mxu1 %v1731_v25  ;;  %v737_v25 = vmul.f32 %v705_v48, %v1785_v51 }
 0x2ad   :  { %1385 = vmatprep.subr.mxu1 %v1757_v36  ;;  %v717_v36 = vld [vmem:[%s2085_s6 + $0xb0] sm:$0xff] }
 0x2ae   :  { %1386 = vmatpush3.msra.mxu1 %v1759_v37  ;;  %v701_v37 = vld [vmem:[%s2085_s6 + $0x30] sm:$0xff] }
 0x2af   :  { %1387 = vmatprep.subr.mxu1 %v1781_v49  ;;  %v749_v49 = vmul.f32 %v717_v36, %v1785_v51 }
 0x2b0   :  { %1388 = vmatpush3.msra.mxu1 %v1783_v50 }
 0x2b1   :  { %1389 = vmatprep.subr.mxu1 %v753_v24  ;;  %v862_v24 = vld [vmem:[%s2087_s7 + $0x38] sm:$0xff] }
 0x2b2   :  { %1390 = vmatpush3.msra.mxu1 %v737_v25  ;;  %v861_v25 = vld [vmem:[%s2087_s7 + $0x30] sm:$0xff]  ;;  %1474 = vmatprep.subr.mxu0 %v862_v24 }
 0x2b3   :  { %1391 = vmatprep.subr.mxu1 %v1733_v26  ;;  %v733_v26 = vmul.f32 %v701_v37, %v1785_v51 }
 0x2b4   :  { %1392 = vmatpush3.msra.mxu1 %v1735_v27  ;;  %v713_v27 = vld [vmem:[%s2085_s6 + $0x90] sm:$0xff] }
 0x2b5   :  { %1393 = vmatprep.subr.mxu1 %v1761_v38  ;;  %v697_v38 = vld [vmem:[%s2085_s6 + $0x10] sm:$0xff] }
 0x2b6   :  { %1394 = vmatpush3.msra.mxu1 %v1763_v39  ;;  %v745_v39 = vmul.f32 %v713_v27, %v1785_v51 }
 0x2b7   :  { %1395 = vmatprep.subr.mxu1 %v1787_v52 }
 0x2b8   :  { %1396 = vmatpush3.msra.mxu1 %v1789_v53 }
 0x2b9   :  { %1397 = vmatprep.subr.mxu1 %v749_v49 }
 0x2ba   :  { %1398 = vmatpush3.msra.mxu1 %v733_v26 }
 0x2bb   :  { %1399 = vmatprep.subr.mxu1 %v1752_v34  ;;  %v729_v34 = vmul.f32 %v697_v38, %v1785_v51 }
 0x2bc   :  { %1400 = vmatpush3.msra.mxu1 %v1754_v35  ;;  %v466_v35 = vpop.permute.xlu0 %465 }
 0x2bd   :  { %1401 = vmatprep.subr.mxu1 %v1771_v43 }
 0x2be   :  { %1402 = vmatpush3.msra.mxu1 %v1773_v44 }
 0x2bf   :  { %1403 = vmatprep.subr.mxu1 %v1806_v58 }
 0x2c0   :  { %1404 = vmatpush3.msra.mxu1 %v1808_v59 }
 0x2c1   :  { %1405 = vmatprep.subr.mxu1 %v745_v39 }
 0x2c2   :  { %1406 = vmatpush3.msra.mxu1 %v729_v34 }
 0x2c3   :  { %1407 = vmatprep.subr.mxu1 %v1775_v45 }
 0x2c4   :  { %1408 = vmatpush3.msra.mxu1 %v1777_v46 }
 0x2c5   :  { %1409 = vmatprep.subr.mxu1 %v1810_v60  ;;  %v405_v43 = vpop.xlane.xlu0 %404  ;;  %v444_v60 = vpop.permute.xlu1 %443 }
 0x2c6   :  { %1410 = vmatpush3.msra.mxu1 %v1812_v61  ;;  %v413_v44 = vsub.f32 %v1881_v47, %v405_v43  ;;  %v414_v50 = vsub.f32 %v1879_v41, %v405_v43  ;;  %v475_v61 = vsel %vm254_vm3, %v1841_v14, %v1893_v11  ;;  %v476_v41 = vsel %vm254_vm3, %v1871_v21, %v444_v60 }
 0x2c7   :  { %v479_v16 = vsel %vm256_vm4, %v475_v61, %v1895_v12  ;;  %v1349_v61 = vld [vmem:[%s2088_s4] ss:$0 sm:$0xff] }
 0x2c8   :  { %v425_v52 = vmul.f32 1.442695, %v413_v44  ;;  %v427_v53 = vmul.f32 1.442695, %v414_v50 }
 0x2c9   :  { %v408_v58 = vpop.xlane.xlu0 %407  ;;  %v468_v9 = vpop.permute.xlu1 %467 }
 0x2ca   :  { %1545 = vpow2.f32 %v425_v52  ;;  %v415_v51 = vsub.f32 %v1887_v63, %v408_v58  ;;  %v416_v59 = vsub.f32 %v1883_v57, %v408_v58  ;;  %v483_v57 = vsel %vm258_vm5, %v479_v16, %v466_v35  ;;  %v858_v58 = vld [vmem:[%s2087_s7 + $0x18] sm:$0xff] }
 0x2cb   :  { %1547 = vpow2.f32 %v427_v53 }
 0x2cc   :  { %v429_v45 = vmul.f32 1.442695, %v415_v51  ;;  %v431_v46 = vmul.f32 1.442695, %v416_v59  ;;  %v857_v51 = vld [vmem:[%s2087_s7 + $0x10] sm:$0xff]  ;;  %v856_v59 = vld [vmem:[%s2087_s7 + $0x8] sm:$0xff] }
 0x2cd   :  { %v456_v47 = vpop.permute.xlu0 %455 }
 0x2ce   :  { %1549 = vpow2.f32 %v429_v45  ;;  %v480_v20 = vsel %vm256_vm4, %v476_v41, %v456_v47  ;;  %v855_v45 = vld [vmem:[%s2087_s7] sm:$0xff] }
 0x2cf   :  { %1551 = vpow2.f32 %v431_v46  ;;  %v484_v29 = vsel %vm258_vm5, %v480_v20, %v468_v9  ;;  %v1582_v46 = vmov 4  }
 0x2d0   :  { %1536 = vset.pattern.permute.xlu1 %v1582_v46  ;;  %1535 = vset.pattern.permute.xlu0 %v1582_v46 }
 0x2d7   :  { %v1546_v63 = vpop.eup %1545 }
 0x2d8   :  { %v1548_v19 = vpop.eup %1547  ;;  %v489_v22 = vmul.f32 %v1546_v63, %v483_v57 }
 0x2d9   :  { %v490_v23 = vmul.f32 %v1548_v19, %v483_v57 }
 0x2db   :  { %v1550_v28 = vpop.eup %1549  ;;  %567 = vmatprep.mubr.f32.mxu1 %v490_v23 }
 0x2dc   :  { %v1552_v11 = vpop.eup %1551  ;;  %v491_v30 = vmul.f32 %v1550_v28, %v484_v29  ;;  %568 = vmatmul.mubr.f32.gmra.mxu1 %v489_v22 }
 0x2dd   :  { %v492_v31 = vmul.f32 %v1552_v11, %v484_v29 }
 0x2df   :  { %572 = vmatprep.mubr.f32.mxu1 %v492_v31 }
 0x2e0   :  { %573 = vmatmul.mubr.f32.gmra.mxu1 %v491_v30 }
 0x367   :  { %v559_v12 = vpop.f32.mrf.mxu1 }
 0x368   :  { %v578_v32 = vmax.f32 %v559_v12, 1e-30 }
 0x369   :  { %v561_v7 = vpop.f32.mrf.mxu1 }
 0x36a   :  { %1553 = vrcp.f32 %v578_v32 }
 0x36b   :  { %v564_v8 = vpop.f32.mrf.mxu1 }
 0x36c   :  { %v579_v5 = vmax.f32 %v564_v8, 1e-30 }
 0x36d   :  { %v566_v33 = vpop.f32.mrf.mxu1 }
 0x36e   :  { %1555 = vrcp.f32 %v579_v5  ;;  %v960_v5 = vld [vmem:[%s2089_s8] sm:$0x1] }
 0x377   :  { %v1554_v17 = vpop.eup %1553 }
 0x378   :  { %1345 = vmatmul.mubr.msk.f32.vlgmr.msra.gmra.mxu0 %vm283_vm2, %v1554_v17 }
 0x379   :  { %668 = vmatprep.mubr.f32.mxu0 %v1577_v3  ;;  %1475 = vmatpush3.msra.mxu0 %v862_v24 }
 0x37a   :  { %1476 = vmatprep.subr.mxu0 %v861_v25 }
 0x37b   :  { %v1556_v55 = vpop.eup %1555  ;;  %1477 = vmatpush3.msra.mxu0 %v861_v25 }
 0x37c   :  { %1346 = vmatmul.mubr.msk.f32.gmra.mxu0 %vm283_vm2, %v1556_v55 }
 0x37d   :  { %674 = vmatprep.mubr.f32.mxu0 %v1577_v3 }
 0x39c   :  { %v569_v62 = vpop.f32.mrf.mxu1 }
 0x39d   :  { %v580_v0 = vmax.f32 %v569_v62, 1e-30 }
 0x39e   :  { %v571_v54 = vpop.f32.mrf.mxu1 }
 0x39f   :  { %1557 = vrcp.f32 %v580_v0 }
 0x3a0   :  { %v574_v56 = vpop.f32.mrf.mxu1 }
 0x3a1   :  { %v581_v1 = vmax.f32 %v574_v56, 1e-30 }
 0x3a2   :  { %v576_v4 = vpop.f32.mrf.mxu1 }
 0x3a3   :  { %1559 = vrcp.f32 %v581_v1 }
 0x3ac   :  { %v1558_v6 = vpop.eup %1557 }
 0x3ad   :  { %1347 = vmatmul.mubr.msk.f32.gmra.mxu0 %vm283_vm2, %v1558_v6 }
 0x3ae   :  { %680 = vmatprep.mubr.f32.mxu0 %v1577_v3 }
 0x3b0   :  { %v1560_v48 = vpop.eup %1559 }
 0x3b1   :  { %1348 = vmatmul.mubr.msk.f32.gmra.mxu0 %vm283_vm2, %v1560_v48 }
 0x438   :  { %v664_v36 = vpop.f32.mrf.mxu0 }
 0x439   :  { %v687_v26 = vmul.f32 %v664_v36, %v1904_v18 }
 0x43a   :  { %v666_v37 = vpop.f32.mrf.mxu0 }
 0x43b   :  { %v688_v49 = vmul.f32 %v666_v37, %v1906_v42 }
 0x43c   :  { %v670_v27 = vpop.f32.mrf.mxu0 }
 0x43d   :  { %830 = vmatprep.mubr.f32.mxu1 %v688_v49  ;;  %v689_v34 = vmul.f32 %v670_v27, %v1918_v2  ;;  %v859_v2 = vld [vmem:[%s2087_s7 + $0x20] sm:$0xff] }
 0x43e   :  { %v672_v38 = vpop.f32.mrf.mxu0  ;;  %831 = vmatmul.mubr.f32.vlgmr.msra.gmra.mxu1 %v687_v26 }
 0x43f   :  { %v690_v39 = vmul.f32 %v672_v38, %v1922_v15  ;;  %v860_v15 = vld [vmem:[%s2087_s7 + $0x28] sm:$0xff] }
 0x440   :  { %1478 = vmatprep.subr.mxu0 %v860_v15 }
 0x441   :  { %835 = vmatprep.mubr.f32.mxu1 %v690_v39  ;;  %1479 = vmatpush3.msra.mxu0 %v860_v15 }
 0x442   :  { %836 = vmatmul.mubr.f32.gmra.mxu1 %v689_v34  ;;  %1480 = vmatprep.subr.mxu0 %v859_v2 }
 0x443   :  { %1481 = vmatpush3.msra.mxu0 %v859_v2 }
 0x444   :  { %1482 = vmatprep.subr.mxu0 %v858_v58 }
 0x445   :  { %1483 = vmatpush3.msra.mxu0 %v858_v58 }
 0x446   :  { %1484 = vmatprep.subr.mxu0 %v857_v51 }
 0x447   :  { %1485 = vmatpush3.msra.mxu0 %v857_v51 }
 0x448   :  { %1486 = vmatprep.subr.mxu0 %v856_v59 }
 0x449   :  { %1487 = vmatpush3.msra.mxu0 %v856_v59 }
 0x44a   :  { %1488 = vmatprep.subr.mxu0 %v855_v45 }
 0x44b   :  { %1489 = vmatpush3.msra.mxu0 %v855_v45 }
 0x44c   :  { %1496 = vmatprep.subr.mxu0 %v1577_v3 }
 0x46d   :  { %v676_v35 = vpop.f32.mrf.mxu0 }
 0x46e   :  { %v691_v50 = vmul.f32 %v676_v35, %v489_v22 }
 0x46f   :  { %v678_v43 = vpop.f32.mrf.mxu0 }
 0x470   :  { %v692_v44 = vmul.f32 %v678_v43, %v490_v23 }
 0x471   :  { %v682_v52 = vpop.f32.mrf.mxu0 }
 0x472   :  { %840 = vmatprep.mubr.f32.mxu1 %v692_v44  ;;  %v693_v18 = vmul.f32 %v682_v52, %v491_v30 }
 0x473   :  { %v684_v53 = vpop.f32.mrf.mxu0  ;;  %841 = vmatmul.mubr.f32.gmra.mxu1 %v691_v50 }
 0x474   :  { %v694_v42 = vmul.f32 %v684_v53, %v492_v31 }
 0x476   :  { %845 = vmatprep.mubr.f32.mxu1 %v694_v42 }
 0x477   :  { %846 = vmatmul.mubr.f32.gmra.mxu1 %v693_v18 }
 0x4fe   :  { %v1411_v60 = vpop.f32.mrf.mxu1 }
 0x500   :  { %v1412_v41 = vpop.f32.mrf.mxu1 }
 0x501   :  { %v1413_v47 = vadd.f32 %v1412_v41, %v1411_v60 }
 0x502   :  { %v1414_v16 = vpop.f32.mrf.mxu1 }
 0x503   :  { %v833_v63 = vadd.f32 %v1413_v47, %v1349_v61 }
 0x504   :  { %v1415_v57 = vpop.f32.mrf.mxu1 }
 0x505   :  { %v851_v19 = vmax.f32 %v833_v63, 0.0  ;;  %v1416_v20 = vadd.f32 %v1415_v57, %v1414_v16 }
 0x507   :  { %v838_v9 = vadd.f32 %v1416_v20, %v1349_v61  ;;  %1490 = vmatprep.mubr.msk.f32.mxu0 %vm256_vm4, %v851_v19 }
 0x509   :  { %v852_v22 = vmax.f32 %v838_v9, 0.0 }
 0x50b   :  { %1491 = vmatmul.mubr.msk.f32.vlgmr.msra.gmra.mxu0 %vm256_vm4, %v852_v22 }
 0x533   :  { %v1417_v23 = vpop.f32.mrf.mxu1 }
 0x535   :  { %v1418_v28 = vpop.f32.mrf.mxu1 }
 0x536   :  { %v1419_v29 = vadd.f32 %v1418_v28, %v1417_v23 }
 0x537   :  { %v1420_v11 = vpop.f32.mrf.mxu1 }
 0x538   :  { %v843_v30 = vadd.f32 %v1419_v29, %v1349_v61 }
 0x539   :  { %v1421_v31 = vpop.f32.mrf.mxu1 }
 0x53a   :  { %v853_v12 = vmax.f32 %v843_v30, 0.0  ;;  %v1422_v32 = vadd.f32 %v1421_v31, %v1420_v11 }
 0x53c   :  { %v848_v7 = vadd.f32 %v1422_v32, %v1349_v61  ;;  %1493 = vmatprep.mubr.msk.f32.mxu0 %vm256_vm4, %v853_v12 }
 0x53e   :  { %v854_v8 = vmax.f32 %v848_v7, 0.0 }
 0x540   :  { %1494 = vmatmul.mubr.msk.f32.gmra.mxu0 %vm256_vm4, %v854_v8 }
 0x541   :  { %1497 = vmatpush3.xpose.msk.msra.mxu0 %vm256_vm4, %v854_v8  ;;  %1504 = vmatprep.mubr.msk.f32.mxu0 %vm1578_vm1, %v1577_v3 }
 0x542   :  { %1498 = vmatprep.subr.mxu0 %v1577_v3 }
 0x545   :  { %1499 = vmatpush3.xpose.msk.msra.mxu0 %vm256_vm4, %v853_v12 }
 0x546   :  { %1500 = vmatprep.subr.mxu0 %v1577_v3 }
 0x549   :  { %1501 = vmatpush3.xpose.msk.msra.mxu0 %vm256_vm4, %v852_v22 }
 0x54a   :  { %1502 = vmatprep.subr.mxu0 %v1577_v3 }
 0x54d   :  { %1503 = vmatpush3.xpose.msk.msra.mxu0 %vm256_vm4, %v851_v19 }
 0x550   :  { %1505 = vmatmul.mubr.msk.f32.vlgmr.msra.gmra.mxu0 %vm256_vm4, %v960_v5 }
 0x5cb   :  { %v1492_v33 = vpop.f32.mrf.mxu0 }
 0x5cc   :  { %1041 = vperm.xlu1 %1536, %v1492_v33  }
 0x5cd   :  { %v941_v17 = vpop.f32.mrf.mxu0 }
 0x5ce   :  { %1036 = vperm.xlu0 %1535, %v941_v17  }
 0x600   :  { %v1495_v55 = vpop.f32.mrf.mxu0 }
 0x601   :  { %1051 = vperm.xlu0 %1535, %v1495_v55   ;;  %1507 = vmatprep.subr.mxu0 %v1495_v55 }
 0x602   :  { %v951_v62 = vpop.f32.mrf.mxu0  ;;  %1508 = vmatpush3.msra.mxu0 %v1495_v55 }
 0x603   :  { %1046 = vperm.xlu1 %1536, %v951_v62   ;;  %1509 = vmatprep.subr.mxu0 %v951_v62 }
 0x604   :  { %1510 = vmatpush3.msra.mxu0 %v951_v62  ;;  %v1219_v62 = vld [vmem:[%s2090_s10] sm:$0xff] }
 0x605   :  { %1511 = vmatprep.subr.mxu0 %v1492_v33  ;;  %1521 = vmatprep.subr.mxu1 %v1219_v62 }
 0x606   :  { %1512 = vmatpush3.msra.mxu0 %v1492_v33  ;;  %1522 = vmatpush3.msra.mxu1 %v1219_v62 }
 0x607   :  { %1513 = vmatprep.subr.mxu0 %v941_v17 }
 0x608   :  { %1514 = vmatpush3.msra.mxu0 %v941_v17 }
 0x610   :  { %v1030_v3 = vpop.f32.mrf.mxu0 }
 0x611   :  { %v1057_v54 = vrot.slane %v1030_v3, %v1864_v40 }
 0x612   :  { %v1506_v0 = vpop.f32.mrf.mxu0 }
 0x647   :  { %v1042_v56 = vpop.permute.xlu1 %1041 }
 0x648   :  { %v1059_v1 = vadd.f32 %v1057_v54, %v1042_v56 }
 0x649   :  { %v1037_v4 = vpop.permute.xlu0 %1036 }
 0x64a   :  { %v1063_v6 = vmul.f32 0.2, %v1059_v1  ;;  %v1058_v48 = vadd.f32 %v1057_v54, %v1037_v4 }
 0x64c   :  { %v1062_v24 = vmul.f32 0.2, %v1058_v48  ;;  %v1067_v25 = vmax.f32 %v1059_v1, %v1063_v6  ;;  %v1363_v1 = vld [vmem:[%s2091_s9] ss:$0 sm:$0xff] }
 0x64e   :  { %v1073_v36 = vsel %vm254_vm3, %v1067_v25, -inf  ;;  %v1066_v37 = vmax.f32 %v1058_v48, %v1062_v24 }
 0x64f   :  { %1074 = vmax.xlane.f32.xlu0 %v1073_v36 }
 0x650   :  { %v1070_v49 = vsel %vm254_vm3, %v1066_v37, -inf }
 0x651   :  { %1071 = vmax.xlane.f32.xlu1 %v1070_v49 }
 0x67c   :  { %v1052_v26 = vpop.permute.xlu0 %1051 }
 0x67d   :  { %v1061_v27 = vadd.f32 %v1057_v54, %v1052_v26 }
 0x67e   :  { %v1047_v38 = vpop.permute.xlu1 %1046 }
 0x67f   :  { %v1065_v39 = vmul.f32 0.2, %v1061_v27  ;;  %v1060_v34 = vadd.f32 %v1057_v54, %v1047_v38 }
 0x681   :  { %v1064_v40 = vmul.f32 0.2, %v1060_v34  ;;  %v1069_v35 = vmax.f32 %v1061_v27, %v1065_v39 }
 0x683   :  { %v1079_v43 = vsel %vm254_vm3, %v1069_v35, -inf  ;;  %v1068_v44 = vmax.f32 %v1060_v34, %v1064_v40 }
 0x684   :  { %1080 = vmax.xlane.f32.xlu1 %v1079_v43 }
 0x685   :  { %v1076_v50 = vsel %vm254_vm3, %v1068_v44, -inf }
 0x686   :  { %1077 = vmax.xlane.f32.xlu0 %v1076_v50 }
 0x6d8   :  { %v1075_v52 = vpop.xlane.xlu0 %1074 }
 0x6d9   :  { %v1083_v53 = vsub.f32 %v1067_v25, %v1075_v52 }
 0x6da   :  { %v1072_v42 = vpop.xlane.xlu1 %1071 }
 0x6db   :  { %v1088_v18 = vmul.f32 1.442695, %v1083_v53  ;;  %v1082_v15 = vsub.f32 %v1066_v37, %v1072_v42 }
 0x6dd   :  { %1561 = vpow2.f32 %v1088_v18  ;;  %v1086_v2 = vmul.f32 1.442695, %v1082_v15 }
 0x6df   :  { %1563 = vpow2.f32 %v1086_v2 }
 0x6ea   :  { %v1562_v58 = vpop.eup %1561 }
 0x6eb   :  { %v1095_v51 = vmul.f32 %v1562_v58, %v1835_v13 }
 0x6ec   :  { %v1564_v59 = vpop.eup %1563 }
 0x6ed   :  { %v1101_v45 = vsel %vm254_vm3, %v1095_v51, 0.0  ;;  %v1094_v46 = vmul.f32 %v1564_v59, %v1827_v10 }
 0x6ee   :  { %1102 = vadd.xlane.f32.xlu1 %v1101_v45 }
 0x6ef   :  { %v1098_v60 = vsel %vm254_vm3, %v1094_v46, 0.0 }
 0x6f0   :  { %1099 = vadd.xlane.f32.xlu0 %v1098_v60 }
 0x70d   :  { %v1081_v61 = vpop.xlane.xlu1 %1080 }
 0x70e   :  { %v1085_v41 = vsub.f32 %v1069_v35, %v1081_v61 }
 0x70f   :  { %v1078_v47 = vpop.xlane.xlu0 %1077 }
 0x710   :  { %v1092_v16 = vmul.f32 1.442695, %v1085_v41  ;;  %v1084_v63 = vsub.f32 %v1068_v44, %v1078_v47 }
 0x712   :  { %1565 = vpow2.f32 %v1092_v16  ;;  %v1090_v57 = vmul.f32 1.442695, %v1084_v63 }
 0x714   :  { %1567 = vpow2.f32 %v1090_v57 }
 0x71f   :  { %v1566_v19 = vpop.eup %1565 }
 0x720   :  { %v1097_v13 = vmul.f32 %v1566_v19, %v1871_v21 }
 0x721   :  { %v1568_v20 = vpop.eup %1567 }
 0x722   :  { %v1107_v9 = vsel %vm254_vm3, %v1097_v13, 0.0  ;;  %v1096_v10 = vmul.f32 %v1568_v20, %v1841_v14 }
 0x723   :  { %1108 = vadd.xlane.f32.xlu1 %v1107_v9 }
 0x724   :  { %v1104_v22 = vsel %vm254_vm3, %v1096_v10, 0.0 }
 0x725   :  { %1105 = vadd.xlane.f32.xlu0 %v1104_v22 }
 0x777   :  { %v1103_v23 = vpop.xlane.xlu1 %1102 }
 0x778   :  { %v1111_v28 = vmax.f32 %v1103_v23, 1e-30 }
 0x779   :  { %v1100_v29 = vpop.xlane.xlu0 %1099 }
 0x77a   :  { %v1110_v11 = vmax.f32 %v1100_v29, 1e-30  ;;  %1569 = vrcp.f32 %v1111_v28 }
 0x77c   :  { %1571 = vrcp.f32 %v1110_v11 }
 0x787   :  { %v1570_v30 = vpop.eup %1569 }
 0x788   :  { %v1119_v32 = vmul.f32 %v1570_v30, %v1095_v51 }
 0x789   :  { %v1572_v31 = vpop.eup %1571 }
 0x78a   :  { %v1118_v12 = vmul.f32 %v1572_v31, %v1094_v46 }
 0x78c   :  { %1515 = vmatprep.mubr.msk.f32.mxu0 %vm254_vm3, %v1118_v12 }
 0x78d   :  { %1516 = vmatmul.mubr.msk.f32.vlgmr.msra.gmra.mxu0 %vm254_vm3, %v1119_v32 }
 0x7ac   :  { %v1109_v21 = vpop.xlane.xlu1 %1108 }
 0x7ad   :  { %v1113_v14 = vmax.f32 %v1109_v21, 1e-30 }
 0x7ae   :  { %v1106_v7 = vpop.xlane.xlu0 %1105 }
 0x7af   :  { %v1112_v8 = vmax.f32 %v1106_v7, 1e-30  ;;  %1573 = vrcp.f32 %v1113_v14 }
 0x7b1   :  { %1575 = vrcp.f32 %v1112_v8 }
 0x7bc   :  { %v1574_v5 = vpop.eup %1573 }
 0x7bd   :  { %v1121_v55 = vmul.f32 %v1574_v5, %v1097_v13 }
 0x7be   :  { %v1576_v33 = vpop.eup %1575 }
 0x7bf   :  { %v1120_v17 = vmul.f32 %v1576_v33, %v1096_v10 }
 0x7c1   :  { %1518 = vmatprep.mubr.msk.f32.mxu0 %vm254_vm3, %v1120_v17 }
 0x7c2   :  { %1519 = vmatmul.mubr.msk.f32.gmra.mxu0 %vm254_vm3, %v1121_v55 }
 0x84d   :  { %v1517_v3 = vpop.f32.mrf.mxu0 }
 0x84f   :  { %v1200_v0 = vpop.f32.mrf.mxu0 }
 0x850   :  { %1523 = vmatprep.mubr.msk.f32.mxu1 %vm283_vm2, %v1200_v0 }
 0x851   :  { %1524 = vmatmul.mubr.msk.f32.vlgmr.msra.gmra.mxu1 %vm283_vm2, %v1517_v3 }
 0x882   :  { %v1520_v54 = vpop.f32.mrf.mxu0 }
 0x884   :  { %v1210_v56 = vpop.f32.mrf.mxu0 }
 0x885   :  { %1526 = vmatprep.mubr.msk.f32.mxu1 %vm283_vm2, %v1210_v56 }
 0x886   :  { %1527 = vmatmul.mubr.msk.f32.gmra.mxu1 %vm283_vm2, %v1520_v54 }
 0x911   :  { %v1525_v4 = vpop.f32.mrf.mxu1 }
 0x912   :  { %v1311_v6 = vadd.f32 %v1525_v4, %v1363_v1 }
 0x913   :  { %v1305_v48 = vpop.f32.mrf.mxu1 }
 0x914   :  { %1325 = vst [vmem:[%s2092_s11 + $0x8] sm:$0xff] %v1311_v6  ;;  %v1306_v24 = vadd.f32 %v1363_v1, %v1305_v48 }
 0x916   :  { %1324 = vst [vmem:[%s2092_s11] sm:$0xff] %v1306_v24 }
 0x946   :  { %v1528_v25 = vpop.f32.mrf.mxu1 }
 0x947   :  { %v1321_v36 = vadd.f32 %v1528_v25, %v1363_v1 }
 0x948   :  { %v1315_v37 = vpop.f32.mrf.mxu1 }
 0x949   :  { %1327 = vst [vmem:[%s2092_s11 + $0x18] sm:$0xff] %v1321_v36  ;;  %v1316_v49 = vadd.f32 %v1363_v1, %v1315_v37 }
 0x94b   :  { %1326 = vst [vmem:[%s2092_s11 + $0x10] sm:$0xff] %v1316_v49 }

</bundles_post_ra>
